<compile_context>
chip_gen: v6e
topology: v6e:2x2x1
jax: 0.10.0
libtpu: 0.0.40
codegen_flags: <defaults>
</compile_context>

<pallas_src>
import jax
import jax.numpy as jnp
from jax.experimental import pallas as pl
from jax.experimental.pallas import tpu as pltpu

HIDDEN = 256
OUT = 1


def _fwd_hidden(x_ref, w1_ref, b1_ref):
    # ad_layer1 on the MXU with f32 accumulation, then bias + relu1 on the VPU.
    h = jnp.dot(x_ref[...], w1_ref[...], preferred_element_type=jnp.float32)
    return jnp.maximum(h + b1_ref[...], 0.0)
    # dropout1: eval-mode identity.


def _adv_kernel_lane_dense(x_ref, w1_ref, b1_ref, w2_ref, b2_ref, o_ref):
    # x: (TB, D)  w1: (D, 256)  b1: (1, 256)  w2: (1, 256)  b2: SMEM (1,)  o: (1, TB)
    h = _fwd_hidden(x_ref, w1_ref, b1_ref)
    # ad_layer2 (256 -> 1): VPU multiply + XLU lane reduction (no 1-col matmul).
    z = jnp.sum(h * w2_ref[...], axis=-1) + b2_ref[0]                 # (TB,)
    # sigmoid + sublane->lane relayout into the lane-dense output row (XLU slack).
    o_ref[...] = jax.nn.sigmoid(z)[None, :].astype(o_ref.dtype)


def _adv_kernel_col(x_ref, w1_ref, b1_ref, w2_ref, b2_ref, o_ref):
    # Conservative fallback: o is a (TB, 1) column block (previously validated).
    h = _fwd_hidden(x_ref, w1_ref, b1_ref)
    z = jnp.sum(h * w2_ref[...], axis=-1, keepdims=True) + b2_ref[0]  # (TB, 1)
    o_ref[...] = jax.nn.sigmoid(z).astype(o_ref.dtype)


def prepare_params(w1, b1, w2, b2, use_bf16: bool = False):
    """One-time parameter layout preparation (hoisted out of the forward path).

    w1: (256, in_feature) PyTorch layout -> stored as (in_feature, 256)
    w2: (1, 256)          -> stored as a (1, 256) row for the VPU reduce
    b2: stored as a (1,) scalar for SMEM

    use_bf16 only casts w1; x is NOT cast in the wrapper (doing so would add an
    un-fused f32->bf16 HBM pass). Supply bf16 activations for the full benefit.
    """
    w1t = jnp.asarray(w1, jnp.float32).T                        # (D, 256)
    if use_bf16:
        w1t = w1t.astype(jnp.bfloat16)
    b1r = jnp.asarray(b1, jnp.float32).reshape(1, HIDDEN)       # (1, 256)
    w2r = jnp.asarray(w2, jnp.float32).reshape(1, HIDDEN)       # (1, 256)
    b2s = jnp.asarray(b2, jnp.float32).reshape(OUT)             # (1,) scalar
    return w1t, b1r, w2r, b2s


def _vmem_budget_and_cap():
    """Generation-aware VMEM working-set budget and vmem_limit_bytes cap."""
    try:
        cap_bytes = int(pltpu.get_tpu_info().vmem_capacity_bytes)
    except Exception:
        cap_bytes = 64 << 20                 # conservative: assume v7x-class VMEM
    if cap_bytes >= (96 << 20):              # v5e / v6e: 128 MiB physical VMEM
        return 96 << 20, 120 << 20
    return 44 << 20, 60 << 20                # v7x: 64 MiB physical VMEM


def small_adversarial_network(x, params, *, tb: int = 512, max_tb: int = 4096):
    """Forward pass. x: (B, in_feature). Returns (B, 1) float32."""
    w1t, b1r, w2r, b2s = params
    B, D = x.shape
    assert w1t.shape == (D, HIDDEN), (w1t.shape, D)

    x_item = x.dtype.itemsize
    w_item = w1t.dtype.itemsize
    budget, limit_cap = _vmem_budget_and_cap()

    def vmem_est(tb_, w1_bufs):
        return (2 * tb_ * D * x_item               # x tiles, double-buffered
                + w1_bufs * D * HIDDEN * w_item    # resident w1
                + 2 * tb_ * HIDDEN * 4             # hidden activations / temps
                + 2 * 8 * max(tb_, 128) * 4        # padded output blocks, 2 bufs
                + (64 << 10))                      # biases / w2 row / misc padding

    # Batch tile: grow toward the VMEM budget (amortizes ~0.35us/step overhead,
    # keeps >= 2 grid steps for DMA/compute overlap and the v7x TC split),
    # shrink only when w1 + x tiles demand it. TB stays a multiple of 128 so
    # the lane-dense output block is legal; a single full-extent block is used
    # when the whole batch fits one base tile.
    if B <= tb:
        TB = B
    else:
        TB = int(tb)
        while (TB * 2 <= max_tb and pl.cdiv(B, TB * 2) >= 2
               and vmem_est(TB * 2, 1) <= budget):
            TB *= 2
        while TB > 128 and vmem_est(TB, 1) > budget:
            TB //= 2
    n_steps = pl.cdiv(B, TB)

    # Generous limit (counts w1 double-buffered so the fallback also fits).
    vmem_limit = int(min(max(vmem_est(TB, 2) + (4 << 20), 8 << 20), limit_cap))

    def run(optimized: bool):
        if optimized:
            # Grid-invariant w1 -> single buffer; lane-dense (1, TB) output rows.
            w1_spec = pl.BlockSpec((D, HIDDEN), lambda i: (0, 0),
                                   pipeline_mode=pl.Buffered(1))
            out_shape = jax.ShapeDtypeStruct((1, B), jnp.float32)
            out_spec = pl.BlockSpec((1, TB), lambda i: (0, i))
            kernel = _adv_kernel_lane_dense
        else:
            w1_spec = pl.BlockSpec((D, HIDDEN), lambda i: (0, 0))
            out_shape = jax.ShapeDtypeStruct((B, OUT), jnp.float32)
            out_spec = pl.BlockSpec((TB, OUT), lambda i: (i, 0))
            kernel = _adv_kernel_col
        out = pl.pallas_call(
            kernel,
            out_shape=out_shape,
            grid=(n_steps,),
            in_specs=[
                pl.BlockSpec((TB, D), lambda i: (i, 0)),             # x: streamed tiles
                w1_spec,                                             # w1: resident
                pl.BlockSpec((1, HIDDEN), lambda i: (0, 0)),         # b1
                pl.BlockSpec((1, HIDDEN), lambda i: (0, 0)),         # w2 row
                pl.BlockSpec(memory_space=pltpu.MemorySpace.SMEM),   # b2 scalar
            ],
            out_specs=out_spec,
            compiler_params=pltpu.CompilerParams(
                dimension_semantics=("parallel",),   # shard batch tiles across TCs (v7x)
                vmem_limit_bytes=vmem_limit,
            ),
        )(x, w1t, b1r, w2r, b2s)
        return out.reshape(B, OUT)

    try:
        return run(optimized=True)
    except Exception:
        # TODO(synk): drop this fallback once pl.Buffered(1) single-buffering and
        # the lane-dense epilogue are confirmed on the deployment jax version.
        return run(optimized=False)


def init_params(key, in_feature):
    """Matches the module __init__: weights ~ N(0, 0.01), biases = 0."""
    k1, k2 = jax.random.split(key)
    w1 = 0.01 * jax.random.normal(k1, (HIDDEN, in_feature), dtype=jnp.float32)
    b1 = jnp.zeros((HIDDEN,), dtype=jnp.float32)
    w2 = 0.01 * jax.random.normal(k2, (OUT, HIDDEN), dtype=jnp.float32)
    b2 = jnp.zeros((OUT,), dtype=jnp.float32)
    return w1, b1, w2, b2


def _reference(x, w1, b1, w2, b2):
    h = jnp.maximum(x.astype(jnp.float32) @ w1.T + b1, 0.0)
    return jax.nn.sigmoid(h @ w2.T + b2)


if __name__ == "__main__":
    key = jax.random.PRNGKey(0)
    kx, kx2, kp = jax.random.split(key, 3)

    # --- small smoke test (single full-extent block) ---
    B, in_feature = 8, 32
    x = jax.random.normal(kx, (B, in_feature), dtype=jnp.float32)
    w1, b1, w2, b2 = init_params(kp, in_feature)
    params_f32 = prepare_params(w1, b1, w2, b2)
    out = jax.block_until_ready(small_adversarial_network(x, params_f32))
    ref = _reference(x, w1, b1, w2, b2)
    assert out.shape == (B, 1)
    assert jnp.allclose(out, ref, atol=1e-5, rtol=1e-5)

    # --- multi-tile grid + ragged tail (B % TB != 0; no jnp.pad copy of x) ---
    B2, D2 = 1000, 64
    x2 = jax.random.normal(kx2, (B2, D2), dtype=jnp.float32)
    w1b, b1b, w2b, b2b = init_params(kp, D2)
    params2 = prepare_params(w1b, b1b, w2b, b2b)
    out2 = jax.block_until_ready(small_adversarial_network(x2, params2))
    ref2 = _reference(x2, w1b, b1b, w2b, b2b)
    assert out2.shape == (B2, 1)
    assert jnp.allclose(out2, ref2, atol=1e-5, rtol=1e-5)

    # --- bf16 path: caller supplies bf16 activations AND bf16 w1 ---
    x2_bf16 = x2.astype(jnp.bfloat16)
    params_bf16 = prepare_params(w1b, b1b, w2b, b2b, use_bf16=True)
    out3 = jax.block_until_ready(small_adversarial_network(x2_bf16, params_bf16))
    assert out3.shape == (B2, 1)
    assert jnp.allclose(out3, ref2, atol=2e-2, rtol=2e-2)

    print("KERNEL_OK")
</pallas_src>

<mosaic_0001>
module attributes {stable_mosaic.version = 11 : i64} {
  func.func @_adv_kernel_lane_dense(%arg0: i32, %arg1: memref<8x32xf32, #tpu.memory_space<vmem>>, %arg2: memref<32x256xf32, #tpu.memory_space<vmem>>, %arg3: memref<1x256xf32, #tpu.memory_space<vmem>>, %arg4: memref<1x256xf32, #tpu.memory_space<vmem>>, %arg5: memref<1xf32, #tpu.memory_space<smem>>, %arg6: memref<1x8xf32, #tpu.memory_space<vmem>>) attributes {dimension_semantics = [#tpu.dimension_semantics<parallel>], iteration_bounds = array<i64: 1>, scalar_prefetch = 0 : i64, scratch_operands = 0 : i64, tpu.core_type = #tpu.core_type<tc>, window_params = [{transform_indices = @transform_0, window_bounds = array<i64: 8, 32>}, {pipeline_mode = #tpu.pipeline_mode<synchronous>, transform_indices = @transform_1, window_bounds = array<i64: 32, 256>}, {pipeline_mode = #tpu.pipeline_mode<synchronous>, transform_indices = @transform_2, window_bounds = array<i64: 1, 256>}, {pipeline_mode = #tpu.pipeline_mode<synchronous>, transform_indices = @transform_3, window_bounds = array<i64: 1, 256>}, {transform_indices = @transform_4, window_bounds = array<i64: 1>}, {transform_indices = @transform_5, window_bounds = array<i64: 1, 8>}]} {
    %c0 = arith.constant 0 : index
    %c0_0 = arith.constant 0 : index
    %0 = vector.load %arg1[%c0, %c0_0] : memref<8x32xf32, #tpu.memory_space<vmem>>, vector<8x32xf32>
    %c0_1 = arith.constant 0 : index
    %c0_2 = arith.constant 0 : index
    %1 = vector.load %arg2[%c0_1, %c0_2] : memref<32x256xf32, #tpu.memory_space<vmem>>, vector<32x256xf32>
    %cst = arith.constant dense<0.000000e+00> : vector<8x256xf32>
    %2 = tpu.matmul %0, %1, %cst {dimension_numbers = #tpu.dot_dimension_numbers<[1], [0], [0], [1], [0, 0, 1, 1], [], []>} : vector<8x32xf32>, vector<32x256xf32>, vector<8x256xf32> -> vector<8x256xf32>
    %c0_3 = arith.constant 0 : index
    %c0_4 = arith.constant 0 : index
    %3 = vector.load %arg3[%c0_3, %c0_4] : memref<1x256xf32, #tpu.memory_space<vmem>>, vector<1x256xf32>
    %4 = vector.broadcast %3 : vector<1x256xf32> to vector<8x256xf32>
    %5 = arith.addf %2, %4 : vector<8x256xf32>
    %cst_5 = arith.constant 0.000000e+00 : f32
    %6 = vector.broadcast %cst_5 : f32 to vector<8x256xf32>
    %7 = arith.maximumf %5, %6 : vector<8x256xf32>
    %c0_6 = arith.constant 0 : index
    %c0_7 = arith.constant 0 : index
    %8 = vector.load %arg4[%c0_6, %c0_7] : memref<1x256xf32, #tpu.memory_space<vmem>>, vector<1x256xf32>
    %9 = vector.broadcast %8 : vector<1x256xf32> to vector<8x256xf32>
    %10 = arith.mulf %7, %9 : vector<8x256xf32>
    %cst_8 = arith.constant dense<0.000000e+00> : vector<8xf32>
    %11 = vector.multi_reduction <add>, %10, %cst_8 [1] : vector<8x256xf32> to vector<8xf32>
    %c0_9 = arith.constant 0 : index
    %12 = memref.load %arg5[%c0_9] : memref<1xf32, #tpu.memory_space<smem>>
    %13 = vector.broadcast %12 : f32 to vector<8xf32>
    %14 = arith.addf %11, %13 : vector<8xf32>
    %15 = arith.negf %14 : vector<8xf32>
    %16 = math.exp %15 : vector<8xf32>
    %cst_10 = arith.constant 1.000000e+00 : f32
    %17 = vector.broadcast %cst_10 : f32 to vector<8xf32>
    %18 = arith.addf %17, %16 : vector<8xf32>
    %19 = arith.divf %17, %18 : vector<8xf32>
    %20 = vector.shape_cast %19 : vector<8xf32> to vector<1x8xf32>
    %c0_11 = arith.constant 0 : index
    %c0_12 = arith.constant 0 : index
    %21 = vector.load %arg6[%c0_11, %c0_12] : memref<1x8xf32, #tpu.memory_space<vmem>>, vector<1x8xf32>
    tpu.vector_store %arg6[%c0_11, %c0_12], %20 {strides = array<i32>} : memref<1x8xf32, #tpu.memory_space<vmem>>, vector<1x8xf32>,
    return
  }
  func.func @transform_0(%arg0: i32) -> (i32, i32) {
    %c0_i32 = arith.constant 0 : i32
    %c0_i32_0 = arith.constant 0 : i32
    return %arg0, %c0_i32 : i32, i32
  }
  func.func @transform_1(%arg0: i32) -> (i32, i32) {
    %c0_i32 = arith.constant 0 : i32
    %c0_i32_0 = arith.constant 0 : i32
    %c0_i32_1 = arith.constant 0 : i32
    return %c0_i32, %c0_i32_0 : i32, i32
  }
  func.func @transform_2(%arg0: i32) -> (i32, i32) {
    %c0_i32 = arith.constant 0 : i32
    %c0_i32_0 = arith.constant 0 : i32
    %c0_i32_1 = arith.constant 0 : i32
    return %c0_i32, %c0_i32_0 : i32, i32
  }
  func.func @transform_3(%arg0: i32) -> (i32, i32) {
    %c0_i32 = arith.constant 0 : i32
    %c0_i32_0 = arith.constant 0 : i32
    %c0_i32_1 = arith.constant 0 : i32
    return %c0_i32, %c0_i32_0 : i32, i32
  }
  func.func @transform_4(%arg0: i32) -> i32 {
    %c0_i32 = arith.constant 0 : i32
    %c0_i32_0 = arith.constant 0 : i32
    return %c0_i32 : i32
  }
  func.func @transform_5(%arg0: i32) -> (i32, i32) {
    %c0_i32 = arith.constant 0 : i32
    %c0_i32_0 = arith.constant 0 : i32
    return %c0_i32, %arg0 : i32, i32
  }
}

module attributes {stable_mosaic.version = 11 : i64} {
  func.func @_adv_kernel_col(%arg0: i32, %arg1: memref<8x32xf32, #tpu.memory_space<vmem>>, %arg2: memref<32x256xf32, #tpu.memory_space<vmem>>, %arg3: memref<1x256xf32, #tpu.memory_space<vmem>>, %arg4: memref<1x256xf32, #tpu.memory_space<vmem>>, %arg5: memref<1xf32, #tpu.memory_space<smem>>, %arg6: memref<8x1xf32, #tpu.memory_space<vmem>>) attributes {dimension_semantics = [#tpu.dimension_semantics<parallel>], iteration_bounds = array<i64: 1>, scalar_prefetch = 0 : i64, scratch_operands = 0 : i64, tpu.core_type = #tpu.core_type<tc>, window_params = [{transform_indices = @transform_0, window_bounds = array<i64: 8, 32>}, {pipeline_mode = #tpu.pipeline_mode<synchronous>, transform_indices = @transform_1, window_bounds = array<i64: 32, 256>}, {pipeline_mode = #tpu.pipeline_mode<synchronous>, transform_indices = @transform_2, window_bounds = array<i64: 1, 256>}, {pipeline_mode = #tpu.pipeline_mode<synchronous>, transform_indices = @transform_3, window_bounds = array<i64: 1, 256>}, {transform_indices = @transform_4, window_bounds = array<i64: 1>}, {transform_indices = @transform_5, window_bounds = array<i64: 8, 1>}]} {
    %c0 = arith.constant 0 : index
    %c0_0 = arith.constant 0 : index
    %0 = vector.load %arg1[%c0, %c0_0] : memref<8x32xf32, #tpu.memory_space<vmem>>, vector<8x32xf32>
    %c0_1 = arith.constant 0 : index
    %c0_2 = arith.constant 0 : index
    %1 = vector.load %arg2[%c0_1, %c0_2] : memref<32x256xf32, #tpu.memory_space<vmem>>, vector<32x256xf32>
    %cst = arith.constant dense<0.000000e+00> : vector<8x256xf32>
    %2 = tpu.matmul %0, %1, %cst {dimension_numbers = #tpu.dot_dimension_numbers<[1], [0], [0], [1], [0, 0, 1, 1], [], []>} : vector<8x32xf32>, vector<32x256xf32>, vector<8x256xf32> -> vector<8x256xf32>
    %c0_3 = arith.constant 0 : index
    %c0_4 = arith.constant 0 : index
    %3 = vector.load %arg3[%c0_3, %c0_4] : memref<1x256xf32, #tpu.memory_space<vmem>>, vector<1x256xf32>
    %4 = vector.broadcast %3 : vector<1x256xf32> to vector<8x256xf32>
    %5 = arith.addf %2, %4 : vector<8x256xf32>
    %cst_5 = arith.constant 0.000000e+00 : f32
    %6 = vector.broadcast %cst_5 : f32 to vector<8x256xf32>
    %7 = arith.maximumf %5, %6 : vector<8x256xf32>
    %c0_6 = arith.constant 0 : index
    %c0_7 = arith.constant 0 : index
    %8 = vector.load %arg4[%c0_6, %c0_7] : memref<1x256xf32, #tpu.memory_space<vmem>>, vector<1x256xf32>
    %9 = vector.broadcast %8 : vector<1x256xf32> to vector<8x256xf32>
    %10 = arith.mulf %7, %9 : vector<8x256xf32>
    %cst_8 = arith.constant dense<0.000000e+00> : vector<8xf32>
    %11 = vector.multi_reduction <add>, %10, %cst_8 [1] : vector<8x256xf32> to vector<8xf32>
    %12 = vector.shape_cast %11 : vector<8xf32> to vector<8x1xf32>
    %c0_9 = arith.constant 0 : index
    %13 = memref.load %arg5[%c0_9] : memref<1xf32, #tpu.memory_space<smem>>
    %14 = vector.broadcast %13 : f32 to vector<8x1xf32>
    %15 = arith.addf %12, %14 : vector<8x1xf32>
    %16 = arith.negf %15 : vector<8x1xf32>
    %17 = math.exp %16 : vector<8x1xf32>
    %cst_10 = arith.constant 1.000000e+00 : f32
    %18 = vector.broadcast %cst_10 : f32 to vector<8x1xf32>
    %19 = arith.addf %18, %17 : vector<8x1xf32>
    %20 = arith.divf %18, %19 : vector<8x1xf32>
    %c0_11 = arith.constant 0 : index
    %c0_12 = arith.constant 0 : index
    %21 = vector.load %arg6[%c0_11, %c0_12] : memref<8x1xf32, #tpu.memory_space<vmem>>, vector<8x1xf32>
    tpu.vector_store %arg6[%c0_11, %c0_12], %20 {strides = array<i32>} : memref<8x1xf32, #tpu.memory_space<vmem>>, vector<8x1xf32>,
    return
  }
  func.func @transform_0(%arg0: i32) -> (i32, i32) {
    %c0_i32 = arith.constant 0 : i32
    %c0_i32_0 = arith.constant 0 : i32
    return %arg0, %c0_i32 : i32, i32
  }
  func.func @transform_1(%arg0: i32) -> (i32, i32) {
    %c0_i32 = arith.constant 0 : i32
    %c0_i32_0 = arith.constant 0 : i32
    %c0_i32_1 = arith.constant 0 : i32
    return %c0_i32, %c0_i32_0 : i32, i32
  }
  func.func @transform_2(%arg0: i32) -> (i32, i32) {
    %c0_i32 = arith.constant 0 : i32
    %c0_i32_0 = arith.constant 0 : i32
    %c0_i32_1 = arith.constant 0 : i32
    return %c0_i32, %c0_i32_0 : i32, i32
  }
  func.func @transform_3(%arg0: i32) -> (i32, i32) {
    %c0_i32 = arith.constant 0 : i32
    %c0_i32_0 = arith.constant 0 : i32
    %c0_i32_1 = arith.constant 0 : i32
    return %c0_i32, %c0_i32_0 : i32, i32
  }
  func.func @transform_4(%arg0: i32) -> i32 {
    %c0_i32 = arith.constant 0 : i32
    %c0_i32_0 = arith.constant 0 : i32
    return %c0_i32 : i32
  }
  func.func @transform_5(%arg0: i32) -> (i32, i32) {
    %c0_i32 = arith.constant 0 : i32
    %c0_i32_0 = arith.constant 0 : i32
    return %arg0, %c0_i32 : i32, i32
  }
}

</mosaic_0001>

<bundles_post_ra>
// kernel: tpu_custom_call.1
= control target key start
LH: loop header
LB: loop body
LE: loop exit
PB: predicated region body
PF: predicated region fallthrough
CT: control target
= control target key end

     0   :  { %11 = vsyncpa [#allocation4], 0  ;;  %s330_s0 = inlined_call_operand.hbm [shape: f32[8,32], index: 0, kind: input, shape index: {}]   ;;  %s331_s1 = inlined_call_operand.hbm [shape: f32[32,256], index: 1, kind: input, shape index: {}]   ;;  %s332_s2 = inlined_call_operand.vmem [shape: f32[1,256], index: 2, kind: input, shape index: {}]   ;;  %s333_s3 = inlined_call_operand.vmem [shape: f32[1,256], index: 3, kind: input, shape index: {}]   ;;  %s334_s4 = inlined_call_operand.<no memory space> [shape: f32[1], index: 4, kind: input, shape index: {}]   ;;  %s335_s5 = inlined_call_operand.hbm [shape: f32[1,8], index: 5, kind: output, shape index: {}]  }
   0x1   :  { %12 = vsyncpa [#allocation7], 0 }
   0x2   :  { %13 = vsyncpa [#allocation5], 0  ;;  %s276_s18 = smov [#allocation3]   ;;  %s277_s20 = smov [#allocation6]  }
   0x3   :  { %s20_s19 = sshll.u32 %s276_s18, 4  ;;  %s29_s21 = sshll.u32 %s277_s20, 4  ;;  %s21_s19 = int_to_ptr.vmem [resolvable:$true] %s20_s19  ;;  %s30_s21 = int_to_ptr.vmem [resolvable:$true] %s29_s21 }
   0x4   :  { %s218_s22 = scalar_lea.vmem %s21_s19, 128  ;;  %p223_p1 = scmp.lt.s32.totalorder %s21_s19, %s21_s19 }
   0x5   :  { %p219_p0 = scmp.ne.s32.totalorder %s21_s19, %s218_s22  ;;  %p224_p2 = scmp.lt.s32.totalorder %s218_s22, %s218_s22 }
   0x7   :  { %p225_p3 = por %p224_p2, %p223_p1 }
   0x9   :  { %p226_p4 = pnand %p225_p3, %p219_p0 }
   0xb   :  { %229 = shalt.err (!%p226_p4)
}
   0xc   :  { %23 = dma.hbm_to_vmem [thread:$0]  %s330_s0, 128, %s21_s19, [#allocation4]  }
   0xd   :  { %s238_s25 = scalar_lea.vmem %s30_s21, 1024  ;;  %p243_p6 = scmp.lt.s32.totalorder %s30_s21, %s30_s21 }
   0xe   :  { %p239_p5 = scmp.ne.s32.totalorder %s30_s21, %s238_s25  ;;  %p244_p7 = scmp.lt.s32.totalorder %s238_s25, %s238_s25 }
  0x10   :  { %p245_p8 = por %p244_p7, %p243_p6 }
  0x12   :  { %p246_p9 = pnand %p245_p8, %p239_p5 }
  0x14   :  { %249 = shalt.err (!%p246_p9)
}
  0x15   :  { %s278_s26 = smov 256   ;;  %s279_s27 = smov 16  }
  0x16   :  { %35 = dma.hbm_to_vmem [thread:$0]  %s331_s1, 1024, %s30_s21, [#allocation7], %s278_s26, %s278_s26, %s279_s27  }
  0x17   :  { %270 = dma.done.wait [#allocation4], 128  }
  0x18   :  { %271 = vsyncadd [#allocation4], 4294967168 }
  0x19   :  { %272 = dma.done.wait [#allocation7], 1024  }
  0x1a   :  { %273 = vsyncadd [#allocation7], 4294966272  ;;  %v280_v0 = vmov 0.0   ;;  %v56_v1 = vld [vmem:[#allocation6 + $0x38] sm:$0xff]  ;;  %v55_v2 = vld [vmem:[#allocation6 + $0x30] sm:$0xff]  ;;  %vm69_vm0 = vcmask 261120   ;;  %v59_v10 = vlaneseq  ;;  %v164_v29 = vstv %s334_s4 }
  0x1b   :  { %137 = vmatprep.mubr.f32.mxu0 %v280_v0  ;;  %v54_v3 = vld [vmem:[#allocation6 + $0x28] sm:$0xff]  ;;  %97 = vmatprep.subr.mxu0 %v56_v1  ;;  %v53_v4 = vld [vmem:[#allocation6 + $0x20] sm:$0xff]  ;;  %v52_v5 = vld [vmem:[#allocation6 + $0x18] sm:$0xff]  ;;  %vm180_vm1 = vcmask 57344  }
  0x1c   :  { %98 = vmatpush1.msra.mxu0 %v55_v2  ;;  %v51_v6 = vld [vmem:[#allocation6 + $0x10] sm:$0xff]  ;;  %v50_v7 = vld [vmem:[#allocation6 + $0x8] sm:$0xff]  ;;  %v49_v8 = vld [vmem:[#allocation6] sm:$0xff]  ;;  %v60_v11 = vshrl.u32 %v59_v10, 7  ;;  %v174_v35 = vand.u32 127, %v59_v10 }
  0x1d   :  { %99 = vmatprep.subr.mxu0 %v54_v3  ;;  %v48_v9 = vld [vmem:[#allocation3] sm:$0xff] }
  0x1e   :  { %100 = vmatpush1.msra.mxu0 %v53_v4  ;;  %v61_v12 = vsub.s32 0, %v60_v11  ;;  %v57_v13 = vld [vmem:[%s332_s2] sm:$0x3]  ;;  %v65_v14 = vsub.s32 1, %v60_v11  ;;  %v177_v36 = vsub.s32 %v174_v35, %v60_v11 }
  0x1f   :  { %101 = vmatprep.subr.mxu0 %v52_v5  ;;  %v146_v18 = vld [vmem:[%s333_s3] sm:$0x3]  ;;  %s281_s3 = smov [#allocation8]  }
  0x20   :  { %102 = vmatpush1.msra.mxu0 %v51_v6  ;;  %v62_v15 = vrot.slane %v57_v13, %v61_v12  ;;  %v66_v16 = vrot.slane %v57_v13, %v65_v14  ;;  %v151_v23 = vrot.slane %v146_v18, %v61_v12  ;;  %v155_v24 = vrot.slane %v146_v18, %v65_v14  ;;  %s188_s8 = sshll.u32 %s281_s3, 4  ;;  %s189_s8 = int_to_ptr.vmem [resolvable:$true] %s188_s8 }
  0x21   :  { %103 = vmatprep.subr.mxu0 %v50_v7  ;;  %s250_s9 = scalar_lea.vmem %s189_s8, 16  ;;  %s254_s10 = scalar_lea.vmem %s189_s8, 32 }
  0x22   :  { %104 = vmatpush1.msra.mxu0 %v49_v8  ;;  %p251_p10 = scmp.ne.s32.totalorder %s189_s8, %s250_s9  ;;  %p255_p11 = scmp.lt.s32.totalorder %s189_s8, %s189_s8 }
  0x23   :  { %198 = vmatmul.mubr.msk.f32.vlgmr.msra.gmra.mxu0 %vm69_vm0, %v48_v9  ;;  %p256_p12 = scmp.lt.s32.totalorder %s254_s10, %s250_s9 }
  0x25   :  { %p257_p13 = por %p256_p12, %p255_p11 }
  0x27   :  { %p258_p0 = pnand %p257_p13, %p251_p10 }
  0xe3   :  { %v139_v17 = vpop.f32.mrf.mxu0 }
  0xe4   :  { %v140_v19 = vadd.f32 %v139_v17, %v62_v15 }
  0xe5   :  { %v141_v20 = vpop.f32.mrf.mxu0 }
  0xe6   :  { %v144_v21 = vmax.f32 %v140_v19, 0.0  ;;  %v142_v22 = vadd.f32 %v141_v20, %v66_v16 }
  0xe8   :  { %v145_v25 = vmax.f32 %v142_v22, 0.0  ;;  %v158_v26 = vmul.f32 %v151_v23, %v144_v21 }
  0xea   :  { %v159_v27 = vmul.f32 %v155_v24, %v145_v25 }
  0xec   :  { %v160_v28 = vadd.f32 %v159_v27, %v158_v26 }
  0xee   :  { %161 = vadd.xlane.f32.xlu0 %v160_v28 }
 0x177   :  { %v162_v30 = vpop.xlane.xlu0 %161 }
 0x178   :  { %v165_v31 = vadd.f32 %v164_v29, %v162_v30 }
 0x17a   :  { %v199_v32 = vmul.f32 -1.442695, %v165_v31 }
 0x17c   :  { %206 = vpow2.f32 %v199_v32 }
 0x189   :  { %v207_v33 = vpop.eup %206 }
 0x18a   :  { %v169_v34 = vadd.f32 1.0, %v207_v33 }
 0x18c   :  { %208 = vrcp.f32 %v169_v34 }
 0x199   :  { %v209_v37 = vpop.eup %208 }
 0x19a   :  { %v178_v38 = vrot.slane %v209_v37, %v177_v36 }
 0x19c   :  { %181 = vst.msk [vmem:[#allocation8] sm:$0x1] %vm180_vm1, %v178_v38 }
 0x19d   :  { %261 = shalt.err (!%p258_p0)
}
 0x19e   :  { %191 = dma.vmem_to_hbm [thread:$0]  %s189_s8, 16, %s335_s5, [#allocation5]  }
 0x19f   :  { %274 = dma.done.wait [#allocation5], 16  }
 0x1a0   :  { %275 = vsyncadd [#allocation5], 4294967280 }
 0x1a1   :  { %195 = vsyncpa [#allocation4], 1 }
 0x1a2   :  { %196 = vsyncpa [#allocation7], 1 }
 0x1a3   :  { %197 = vsyncpa [#allocation5], 1 }

// kernel: tpu_custom_call.1
= control target key start
LH: loop header
LB: loop body
LE: loop exit
PB: predicated region body
PF: predicated region fallthrough
CT: control target
= control target key end

     0   :  { %11 = vsyncpa [#allocation4], 0  ;;  %s287_s0 = inlined_call_operand.hbm [shape: f32[8,32], index: 0, kind: input, shape index: {}]   ;;  %s288_s1 = inlined_call_operand.hbm [shape: f32[32,256], index: 1, kind: input, shape index: {}]   ;;  %s289_s2 = inlined_call_operand.vmem [shape: f32[1,256], index: 2, kind: input, shape index: {}]   ;;  %s290_s3 = inlined_call_operand.vmem [shape: f32[1,256], index: 3, kind: input, shape index: {}]   ;;  %s291_s4 = inlined_call_operand.<no memory space> [shape: f32[1], index: 4, kind: input, shape index: {}]   ;;  %s292_s5 = inlined_call_operand.vmem [shape: f32[8,1], index: 5, kind: output, shape index: {}]  }
   0x1   :  { %12 = vsyncpa [#allocation6], 0  ;;  %s234_s18 = smov [#allocation3]   ;;  %s235_s20 = smov [#allocation5]  }
   0x2   :  { %s19_s19 = sshll.u32 %s234_s18, 4  ;;  %s28_s21 = sshll.u32 %s235_s20, 4  ;;  %s20_s19 = int_to_ptr.vmem [resolvable:$true] %s19_s19  ;;  %s29_s21 = int_to_ptr.vmem [resolvable:$true] %s28_s21 }
   0x3   :  { %s198_s22 = scalar_lea.vmem %s20_s19, 128  ;;  %p203_p1 = scmp.lt.s32.totalorder %s20_s19, %s20_s19 }
   0x4   :  { %p199_p0 = scmp.ne.s32.totalorder %s20_s19, %s198_s22  ;;  %p204_p2 = scmp.lt.s32.totalorder %s198_s22, %s198_s22 }
   0x6   :  { %p205_p3 = por %p204_p2, %p203_p1 }
   0x8   :  { %p206_p4 = pnand %p205_p3, %p199_p0 }
   0xa   :  { %209 = shalt.err (!%p206_p4)
}
   0xb   :  { %22 = dma.hbm_to_vmem [thread:$0]  %s287_s0, 128, %s20_s19, [#allocation4]  }
   0xc   :  { %s218_s25 = scalar_lea.vmem %s29_s21, 1024  ;;  %p223_p6 = scmp.lt.s32.totalorder %s29_s21, %s29_s21 }
   0xd   :  { %p219_p5 = scmp.ne.s32.totalorder %s29_s21, %s218_s25  ;;  %p224_p7 = scmp.lt.s32.totalorder %s218_s25, %s218_s25 }
   0xf   :  { %p225_p8 = por %p224_p7, %p223_p6 }
  0x11   :  { %p226_p9 = pnand %p225_p8, %p219_p5 }
  0x13   :  { %229 = shalt.err (!%p226_p9)
}
  0x14   :  { %s236_s26 = smov 256   ;;  %s237_s27 = smov 16  }
  0x15   :  { %34 = dma.hbm_to_vmem [thread:$0]  %s288_s1, 1024, %s29_s21, [#allocation6], %s236_s26, %s236_s26, %s237_s27  }
  0x16   :  { %230 = dma.done.wait [#allocation4], 128  }
  0x17   :  { %231 = vsyncadd [#allocation4], 4294967168 }
  0x18   :  { %232 = dma.done.wait [#allocation6], 1024  }
  0x19   :  { %233 = vsyncadd [#allocation6], 4294966272  ;;  %v238_v0 = vmov 0.0   ;;  %v55_v1 = vld [vmem:[#allocation5 + $0x38] sm:$0xff]  ;;  %v54_v2 = vld [vmem:[#allocation5 + $0x30] sm:$0xff]  ;;  %vm68_vm0 = vcmask 261120   ;;  %v58_v10 = vlaneseq  ;;  %v163_v29 = vstv %s291_s4 }
  0x1a   :  { %136 = vmatprep.mubr.f32.mxu0 %v238_v0  ;;  %v53_v3 = vld [vmem:[#allocation5 + $0x28] sm:$0xff]  ;;  %96 = vmatprep.subr.mxu0 %v55_v1  ;;  %v52_v4 = vld [vmem:[#allocation5 + $0x20] sm:$0xff]  ;;  %v51_v5 = vld [vmem:[#allocation5 + $0x18] sm:$0xff]  ;;  %vm171_vm1 = vcmask 7168  }
  0x1b   :  { %97 = vmatpush1.msra.mxu0 %v54_v2  ;;  %v50_v6 = vld [vmem:[#allocation5 + $0x10] sm:$0xff]  ;;  %v49_v7 = vld [vmem:[#allocation5 + $0x8] sm:$0xff]  ;;  %v48_v8 = vld [vmem:[#allocation5] sm:$0xff]  ;;  %v59_v11 = vshrl.u32 %v58_v10, 7 }
  0x1c   :  { %98 = vmatprep.subr.mxu0 %v53_v3  ;;  %v47_v9 = vld [vmem:[#allocation3] sm:$0xff] }
  0x1d   :  { %99 = vmatpush1.msra.mxu0 %v52_v4  ;;  %v60_v12 = vsub.s32 0, %v59_v11  ;;  %v56_v13 = vld [vmem:[%s289_s2] sm:$0x3]  ;;  %v64_v14 = vsub.s32 1, %v59_v11 }
  0x1e   :  { %100 = vmatprep.subr.mxu0 %v51_v5  ;;  %v145_v18 = vld [vmem:[%s290_s3] sm:$0x3] }
  0x1f   :  { %101 = vmatpush1.msra.mxu0 %v50_v6  ;;  %v61_v15 = vrot.slane %v56_v13, %v60_v12  ;;  %v65_v16 = vrot.slane %v56_v13, %v64_v14  ;;  %v150_v23 = vrot.slane %v145_v18, %v60_v12  ;;  %v154_v24 = vrot.slane %v145_v18, %v64_v14 }
  0x20   :  { %102 = vmatprep.subr.mxu0 %v49_v7 }
  0x21   :  { %103 = vmatpush1.msra.mxu0 %v48_v8 }
  0x22   :  { %179 = vmatmul.mubr.msk.f32.vlgmr.msra.gmra.mxu0 %vm68_vm0, %v47_v9 }
  0xe2   :  { %v138_v17 = vpop.f32.mrf.mxu0 }
  0xe3   :  { %v139_v19 = vadd.f32 %v138_v17, %v61_v15 }
  0xe4   :  { %v140_v20 = vpop.f32.mrf.mxu0 }
  0xe5   :  { %v143_v21 = vmax.f32 %v139_v19, 0.0  ;;  %v141_v22 = vadd.f32 %v140_v20, %v65_v16 }
  0xe7   :  { %v144_v25 = vmax.f32 %v141_v22, 0.0  ;;  %v157_v26 = vmul.f32 %v150_v23, %v143_v21 }
  0xe9   :  { %v158_v27 = vmul.f32 %v154_v24, %v144_v25 }
  0xeb   :  { %v159_v28 = vadd.f32 %v158_v27, %v157_v26 }
  0xed   :  { %160 = vadd.xlane.f32.xlu0 %v159_v28 }
 0x176   :  { %v161_v30 = vpop.xlane.xlu0 %160 }
 0x177   :  { %v164_v31 = vadd.f32 %v163_v29, %v161_v30 }
 0x179   :  { %v180_v32 = vmul.f32 -1.442695, %v164_v31 }
 0x17b   :  { %186 = vpow2.f32 %v180_v32 }
 0x188   :  { %v187_v33 = vpop.eup %186 }
 0x189   :  { %v168_v34 = vadd.f32 1.0, %v187_v33 }
 0x18b   :  { %188 = vrcp.f32 %v168_v34 }
 0x198   :  { %v189_v35 = vpop.eup %188 }
 0x199   :  { %172 = vst.msk [vmem:[%s292_s5] sm:$0xff] %vm171_vm1, %v189_v35 }
 0x19a   :  { %177 = vsyncpa [#allocation4], 1 }
 0x19b   :  { %178 = vsyncpa [#allocation6], 1 }

</bundles_post_ra>
